<compile_context>
chip_gen: v7x
topology: tpu7x:2x2x1
jax: 0.10.0
libtpu: 0.0.40
codegen_flags: <defaults>
</compile_context>

<pallas_src>
import math

import jax
import jax.numpy as jnp
from jax.experimental import pallas as pl
from jax.experimental.pallas import tpu as pltpu

# ----------------------------- config (LlamaConfig) -----------------------------
N_EMBED = 32          # config.n_embed
N_Q_HEADS = 4         # config.n_q_heads
N_KV_HEADS = 2        # config.n_kv_heads
INTERM = 64           # config.interm_dims
RMS_EPS = 1e-6        # config.rms_norm_eps
ROPE_BASE = 10000.0   # config.rope_theta_base
HEAD_DIM = N_EMBED // N_Q_HEADS          # 8
KV_COPIES = N_Q_HEADS // N_KV_HEADS      # 2
ATTN_SCALE = 1.0 / math.sqrt(HEAD_DIM)
Q_W = N_Q_HEADS * HEAD_DIM               # 32
K_W = N_KV_HEADS * HEAD_DIM              # 16
QK_W = Q_W + K_W                         # 48  (RoPE'd region of the projection)
V_OFF = QK_W                             # 48  (start of V lanes)
ROT_OFF = QK_W + K_W                     # 64  (start of [rot(q)|rot(k)] lanes)
PROJ_W = ROT_OFF + QK_W                  # 112 (fused projection width)
INTERM_PAD = 128                         # gate/up padded to a 128-lane stride

BATCH = 2
SEQ = 8


# ----------------------------- Pallas kernel -----------------------------
def _decoder_kernel(x_ref, mask_ref, rope_ref, wqkv_ref, wo_ref, wgu_ref,
                    wd_ref, gains_ref, o_ref):
    x = x_ref[...]                          # (S, E) f32
    mask = mask_ref[...]                    # (S, S) additive mask for this batch
    rope = rope_ref[...]                    # (2, S, QK_W): [cos, sin] tiled per head
    cos = rope[0]
    sin = rope[1]
    gains = gains_ref[...]                  # (2, E)
    g_in = gains[0:1, :]
    g_post = gains[1:2, :]

    def rmsnorm(h, g):
        var = jnp.mean(h * h, axis=-1, keepdims=True)
        return g * (h * jax.lax.rsqrt(var + RMS_EPS))

    # ---- input RMSNorm + fused [q | k | v | rot(q) | rot(k)] projection ----
    # The rotate-half permutation (and its sign) is folded into the rot(*)
    # weight columns in the wrapper, so RoPE below is a single full-row
    # multiply-add with zero in-kernel lane shuffles.
    h = rmsnorm(x, g_in)
    proj = jnp.dot(h, wqkv_ref[...], preferred_element_type=jnp.float32)   # (S, 112)

    qk = proj[:, :QK_W] * cos + proj[:, ROT_OFF:] * sin                    # (S, 48) RoPE'd
    v_all = proj[:, V_OFF:ROT_OFF]                                         # (S, 16)
    q_all = qk[:, :Q_W]                                                    # (S, 32)
    k_all = qk[:, Q_W:]                                                    # (S, 16)

    # ---- GQA attention: all heads in one batched dot_general pair ----
    qh = jnp.stack([q_all[:, hq * HEAD_DIM:(hq + 1) * HEAD_DIM]
                    for hq in range(N_Q_HEADS)], axis=0)                   # (Hq, S, Dh)
    k_sl = [k_all[:, g * HEAD_DIM:(g + 1) * HEAD_DIM] for g in range(N_KV_HEADS)]
    v_sl = [v_all[:, g * HEAD_DIM:(g + 1) * HEAD_DIM] for g in range(N_KV_HEADS)]
    kh = jnp.stack([k_sl[hq // KV_COPIES] for hq in range(N_Q_HEADS)], axis=0)
    vh = jnp.stack([v_sl[hq // KV_COPIES] for hq in range(N_Q_HEADS)], axis=0)

    s = jnp.einsum("hqd,hkd->hqk", qh, kh,
                   preferred_element_type=jnp.float32) * ATTN_SCALE        # (Hq, S, S)
    s = s + mask[None, :, :]
    s = s - jnp.max(s, axis=-1, keepdims=True)
    p = jnp.exp(s)
    # approx reciprocal runs on the EUP slot; probabilities sum to 1 +/- ~1e-4.
    p = p * pl.reciprocal(jnp.sum(p, axis=-1, keepdims=True), approx=True)
    o = jnp.einsum("hqk,hkd->hqd", p, vh, preferred_element_type=jnp.float32)

    attn = jnp.concatenate([o[hq] for hq in range(N_Q_HEADS)], axis=-1)    # (S, E)
    attn = jnp.dot(attn, wo_ref[...], preferred_element_type=jnp.float32)
    h1 = x + attn                                                          # residual

    # ---- post-attention RMSNorm + SwiGLU MLP (gate/up at 128-lane stride) ----
    h2 = rmsnorm(h1, g_post)
    gu = jnp.dot(h2, wgu_ref[...], preferred_element_type=jnp.float32)     # (S, 256)
    gate = gu[:, :INTERM_PAD]                                              # vreg-aligned
    up = gu[:, INTERM_PAD:]                                                # vreg-aligned
    act = gate * jax.nn.sigmoid(gate)                                      # SiLU (pad stays 0)
    mlp = jnp.dot(act * up, wd_ref[...], preferred_element_type=jnp.float32)

    o_ref[...] = h1 + mlp


# ----------------------------- wrapper -----------------------------
def _rotate_half_cols(w, n_heads):
    """Permute+negate columns of a (E, n_heads*HEAD_DIM) projection weight so
    that x @ result == rotate_half(x @ w) (per-head [-back, front])."""
    half = HEAD_DIM // 2
    w3 = w.reshape(w.shape[0], n_heads, HEAD_DIM)
    return jnp.concatenate([-w3[..., half:], w3[..., :half]],
                           axis=-1).reshape(w.shape[0], n_heads * HEAD_DIM)


def llama_decoder_layer(x, attn_mask, position_ids, params):
    # TODO(synk): kv_cache decode-time update path not implemented (kv_cache=None only).
    B, S, E = x.shape
    assert E == N_EMBED and HEAD_DIM % 2 == 0

    # Per-batch additive mask (S, S): scores never grow beyond (S, S).
    mask = attn_mask.reshape(B, S, S).astype(jnp.float32)

    # RoPE cos/sin per row, tiled across the q+k head region (48 lanes).
    cos, sin = rope_cos_sin(position_ids, HEAD_DIM, ROPE_BASE)             # (B, S, Dh)
    n_rope_heads = N_Q_HEADS + N_KV_HEADS
    rope_tab = jnp.stack([jnp.tile(cos, (1, 1, n_rope_heads)),
                          jnp.tile(sin, (1, 1, n_rope_heads))], axis=1)    # (B, 2, S, 48)

    # Fused projection weight: [q | k | v | rot(q) | rot(k)]  -> (E, 112).
    wqkv = jnp.concatenate(
        [params["wq"], params["wk"], params["wv"],
         _rotate_half_cols(params["wq"], N_Q_HEADS),
         _rotate_half_cols(params["wk"], N_KV_HEADS)], axis=1)

    # gate/up padded to a 128-lane stride so the in-kernel split is vreg-aligned.
    zpad = jnp.zeros((E, INTERM_PAD - INTERM), jnp.float32)
    wgu = jnp.concatenate([params["wg"], zpad, params["wu"], zpad], axis=1)   # (E, 256)
    wd = jnp.concatenate(
        [params["wd"], jnp.zeros((INTERM_PAD - INTERM, E), jnp.float32)], axis=0)  # (128, E)

    gains = jnp.concatenate([params["g_in"], params["g_post"]], axis=0)       # (2, E)

    out = pl.pallas_call(
        _decoder_kernel,
        out_shape=jax.ShapeDtypeStruct((B, S, E), jnp.float32),
        grid=(B,),
        in_specs=[
            pl.BlockSpec((None, S, E), lambda b: (b, 0, 0)),                 # x (per batch)
            pl.BlockSpec((None, S, S), lambda b: (b, 0, 0)),                 # mask (per batch)
            pl.BlockSpec((None, 2, S, QK_W), lambda b: (b, 0, 0, 0)),        # rope tables
            pl.BlockSpec((E, PROJ_W), lambda b: (0, 0)),                     # wqkv  (resident)
            pl.BlockSpec((E, E), lambda b: (0, 0)),                          # wo    (resident)
            pl.BlockSpec((E, 2 * INTERM_PAD), lambda b: (0, 0)),             # wgu   (resident)
            pl.BlockSpec((INTERM_PAD, E), lambda b: (0, 0)),                 # wd    (resident)
            pl.BlockSpec((2, E), lambda b: (0, 0)),                          # gains (resident)
        ],
        out_specs=pl.BlockSpec((None, S, E), lambda b: (b, 0, 0)),
        compiler_params=pltpu.CompilerParams(
            dimension_semantics=("parallel",)),                              # megacore on v7x
    )(x, mask, rope_tab, wqkv, params["wo"], wgu, wd, gains)
    return out


# ----------------------------- RoPE tables (matches LlamaRotaryEmbeddings) -----------------------------
def rope_cos_sin(position_ids, head_dim, base):
    B = position_ids.shape[0]
    inv_freq = 1.0 / (base ** (jnp.arange(0, head_dim, 2, dtype=jnp.float32) / head_dim))
    theta = jnp.broadcast_to(inv_freq[None, :, None], (B, head_dim // 2, 1))   # (B, Dh/2, 1)
    m = position_ids[:, None, :].astype(jnp.float32)                           # (B, 1, S)
    m_theta = jnp.matmul(theta, m)                                             # (B, Dh/2, S)
    m_theta = jnp.transpose(m_theta, (0, 2, 1))                                # (B, S, Dh/2)
    m_theta = jnp.concatenate([m_theta, m_theta], axis=-1)                     # (B, S, Dh)
    return jnp.cos(m_theta), jnp.sin(m_theta)


# ----------------------------- pure-JAX reference (correctness check) -----------------------------
def reference(x, mask, cos, sin, p):
    def rmsnorm(h, g):
        var = jnp.mean(h * h, axis=-1, keepdims=True)
        return g * (h * jax.lax.rsqrt(var + RMS_EPS))

    h = rmsnorm(x, p["g_in"])
    q = (h @ p["wq"]).reshape(BATCH, SEQ, N_Q_HEADS, HEAD_DIM).transpose(0, 2, 1, 3)
    k = (h @ p["wk"]).reshape(BATCH, SEQ, N_KV_HEADS, HEAD_DIM).transpose(0, 2, 1, 3)
    v = (h @ p["wv"]).reshape(BATCH, SEQ, N_KV_HEADS, HEAD_DIM).transpose(0, 2, 1, 3)

    def rot(t):
        half = HEAD_DIM // 2
        return jnp.concatenate([-t[..., half:], t[..., :half]], axis=-1)

    c = cos[:, None, :, :]
    s = sin[:, None, :, :]
    q = q * c + rot(q) * s
    k = k * c + rot(k) * s
    k = jnp.repeat(k, KV_COPIES, axis=1)
    v = jnp.repeat(v, KV_COPIES, axis=1)

    scores = jnp.einsum("bhqd,bhkd->bhqk", q, k) * ATTN_SCALE + mask
    pattn = jax.nn.softmax(scores, axis=-1)
    attn = jnp.einsum("bhqk,bhkd->bhqd", pattn, v)
    attn = attn.transpose(0, 2, 1, 3).reshape(BATCH, SEQ, N_EMBED)
    h1 = x + attn @ p["wo"]

    h2 = rmsnorm(h1, p["g_post"])
    gate = h2 @ p["wg"]
    up = h2 @ p["wu"]
    mlp = (gate * jax.nn.sigmoid(gate) * up) @ p["wd"]
    return h1 + mlp


# ----------------------------- main -----------------------------
if __name__ == "__main__":
    key = jax.random.PRNGKey(0)
    keys = jax.random.split(key, 10)
    scale = 0.02

    params = {
        "wq": scale * jax.random.normal(keys[0], (N_EMBED, N_Q_HEADS * HEAD_DIM), jnp.float32),
        "wk": scale * jax.random.normal(keys[1], (N_EMBED, N_KV_HEADS * HEAD_DIM), jnp.float32),
        "wv": scale * jax.random.normal(keys[2], (N_EMBED, N_KV_HEADS * HEAD_DIM), jnp.float32),
        "wo": scale * jax.random.normal(keys[3], (N_EMBED, N_EMBED), jnp.float32),
        "wg": scale * jax.random.normal(keys[4], (N_EMBED, INTERM), jnp.float32),
        "wu": scale * jax.random.normal(keys[5], (N_EMBED, INTERM), jnp.float32),
        "wd": scale * jax.random.normal(keys[6], (INTERM, N_EMBED), jnp.float32),
        "g_in": jnp.ones((1, N_EMBED), jnp.float32),
        "g_post": jnp.ones((1, N_EMBED), jnp.float32),
    }

    x = jax.random.normal(keys[7], (BATCH, SEQ, N_EMBED), jnp.float32)
    position_ids = jnp.broadcast_to(jnp.arange(SEQ, dtype=jnp.int32)[None, :], (BATCH, SEQ))

    # causal additive attention mask, shape (B, 1, S, S)
    causal = jnp.tril(jnp.ones((SEQ, SEQ), jnp.bool_))
    attn_mask = jnp.where(causal, 0.0, -1e9).astype(jnp.float32)
    attn_mask = jnp.broadcast_to(attn_mask[None, None], (BATCH, 1, SEQ, SEQ))

    out = llama_decoder_layer(x, attn_mask, position_ids, params)
    out = jax.block_until_ready(out)

    cos, sin = rope_cos_sin(position_ids, HEAD_DIM, ROPE_BASE)
    ref = reference(x, attn_mask, cos, sin, params)
    assert out.shape == (BATCH, SEQ, N_EMBED)
    # atol allows for the EUP approximate-reciprocal softmax denominator.
    assert jnp.allclose(out, ref, rtol=2e-3, atol=1e-4), float(jnp.max(jnp.abs(out - ref)))

    print("KERNEL_OK")
</pallas_src>

<mosaic_0001>
module attributes {stable_mosaic.version = 11 : i64} {
  func.func @_decoder_kernel(%arg0: i32, %arg1: memref<1x8x32xf32, #tpu.memory_space<vmem>>, %arg2: memref<1x8x8xf32, #tpu.memory_space<vmem>>, %arg3: memref<1x2x8x48xf32, #tpu.memory_space<vmem>>, %arg4: memref<32x112xf32, #tpu.memory_space<vmem>>, %arg5: memref<32x32xf32, #tpu.memory_space<vmem>>, %arg6: memref<32x256xf32, #tpu.memory_space<vmem>>, %arg7: memref<128x32xf32, #tpu.memory_space<vmem>>, %arg8: memref<2x32xf32, #tpu.memory_space<vmem>>, %arg9: memref<1x8x32xf32, #tpu.memory_space<vmem>>) attributes {dimension_semantics = [#tpu.dimension_semantics<parallel>], iteration_bounds = array<i64: 2>, scalar_prefetch = 0 : i64, scratch_operands = 0 : i64, tpu.core_type = #tpu.core_type<tc>, window_params = [{transform_indices = @transform_0, window_bounds = array<i64: 1, 8, 32>}, {transform_indices = @transform_1, window_bounds = array<i64: 1, 8, 8>}, {transform_indices = @transform_2, window_bounds = array<i64: 1, 2, 8, 48>}, {pipeline_mode = #tpu.pipeline_mode<synchronous>, transform_indices = @transform_3, window_bounds = array<i64: 32, 112>}, {pipeline_mode = #tpu.pipeline_mode<synchronous>, transform_indices = @transform_4, window_bounds = array<i64: 32, 32>}, {pipeline_mode = #tpu.pipeline_mode<synchronous>, transform_indices = @transform_5, window_bounds = array<i64: 32, 256>}, {pipeline_mode = #tpu.pipeline_mode<synchronous>, transform_indices = @transform_6, window_bounds = array<i64: 128, 32>}, {pipeline_mode = #tpu.pipeline_mode<synchronous>, transform_indices = @transform_7, window_bounds = array<i64: 2, 32>}, {transform_indices = @transform_8, window_bounds = array<i64: 1, 8, 32>}]} {
    %c0 = arith.constant 0 : index
    %c0_0 = arith.constant 0 : index
    %c0_1 = arith.constant 0 : index
    %0 = vector.load %arg1[%c0, %c0_0, %c0_1] : memref<1x8x32xf32, #tpu.memory_space<vmem>>, vector<1x8x32xf32>
    %1 = vector.shape_cast %0 : vector<1x8x32xf32> to vector<8x32xf32>
    %c0_2 = arith.constant 0 : index
    %c0_3 = arith.constant 0 : index
    %c0_4 = arith.constant 0 : index
    %2 = vector.load %arg2[%c0_2, %c0_3, %c0_4] : memref<1x8x8xf32, #tpu.memory_space<vmem>>, vector<1x8x8xf32>
    %3 = vector.shape_cast %2 : vector<1x8x8xf32> to vector<8x8xf32>
    %c0_5 = arith.constant 0 : index
    %c0_6 = arith.constant 0 : index
    %c0_7 = arith.constant 0 : index
    %c0_8 = arith.constant 0 : index
    %4 = vector.load %arg3[%c0_5, %c0_6, %c0_7, %c0_8] : memref<1x2x8x48xf32, #tpu.memory_space<vmem>>, vector<1x2x8x48xf32>
    %5 = vector.shape_cast %4 : vector<1x2x8x48xf32> to vector<2x8x48xf32>
    %6 = vector.extract_strided_slice %5 {offsets = [0, 0, 0], sizes = [1, 8, 48], strides = [1, 1, 1]} : vector<2x8x48xf32> to vector<1x8x48xf32>
    %7 = vector.shape_cast %6 : vector<1x8x48xf32> to vector<8x48xf32>
    %8 = vector.extract_strided_slice %5 {offsets = [1, 0, 0], sizes = [1, 8, 48], strides = [1, 1, 1]} : vector<2x8x48xf32> to vector<1x8x48xf32>
    %9 = vector.shape_cast %8 : vector<1x8x48xf32> to vector<8x48xf32>
    %c0_9 = arith.constant 0 : index
    %c0_10 = arith.constant 0 : index
    %10 = vector.load %arg8[%c0_9, %c0_10] : memref<2x32xf32, #tpu.memory_space<vmem>>, vector<2x32xf32>
    %11 = vector.extract_strided_slice %10 {offsets = [0, 0], sizes = [1, 32], strides = [1, 1]} : vector<2x32xf32> to vector<1x32xf32>
    %12 = vector.extract_strided_slice %10 {offsets = [1, 0], sizes = [1, 32], strides = [1, 1]} : vector<2x32xf32> to vector<1x32xf32>
    %13 = arith.mulf %1, %1 : vector<8x32xf32>
    %cst = arith.constant dense<0.000000e+00> : vector<8xf32>
    %14 = vector.multi_reduction <add>, %13, %cst [1] : vector<8x32xf32> to vector<8xf32>
    %15 = vector.shape_cast %14 : vector<8xf32> to vector<8x1xf32>
    %cst_11 = arith.constant 3.200000e+01 : f32
    %16 = vector.broadcast %cst_11 : f32 to vector<8x1xf32>
    %17 = arith.divf %15, %16 : vector<8x1xf32>
    %cst_12 = arith.constant 9.99999997E-7 : f32
    %18 = vector.broadcast %cst_12 : f32 to vector<8x1xf32>
    %19 = arith.addf %17, %18 : vector<8x1xf32>
    %20 = math.rsqrt %19 : vector<8x1xf32>
    %21 = vector.broadcast %20 : vector<8x1xf32> to vector<8x32xf32>
    %22 = arith.mulf %1, %21 : vector<8x32xf32>
    %23 = vector.broadcast %11 : vector<1x32xf32> to vector<8x32xf32>
    %24 = arith.mulf %23, %22 : vector<8x32xf32>
    %c0_13 = arith.constant 0 : index
    %c0_14 = arith.constant 0 : index
    %25 = vector.load %arg4[%c0_13, %c0_14] : memref<32x112xf32, #tpu.memory_space<vmem>>, vector<32x112xf32>
    %cst_15 = arith.constant dense<0.000000e+00> : vector<8x112xf32>
    %26 = tpu.matmul %24, %25, %cst_15 {dimension_numbers = #tpu.dot_dimension_numbers<[1], [0], [0], [1], [0, 0, 1, 1], [], []>} : vector<8x32xf32>, vector<32x112xf32>, vector<8x112xf32> -> vector<8x112xf32>
    %27 = vector.extract_strided_slice %26 {offsets = [0, 0], sizes = [8, 48], strides = [1, 1]} : vector<8x112xf32> to vector<8x48xf32>
    %28 = arith.mulf %27, %7 : vector<8x48xf32>
    %29 = vector.extract_strided_slice %26 {offsets = [0, 64], sizes = [8, 48], strides = [1, 1]} : vector<8x112xf32> to vector<8x48xf32>
    %30 = arith.mulf %29, %9 : vector<8x48xf32>
    %31 = arith.addf %28, %30 : vector<8x48xf32>
    %32 = vector.extract_strided_slice %26 {offsets = [0, 48], sizes = [8, 16], strides = [1, 1]} : vector<8x112xf32> to vector<8x16xf32>
    %33 = vector.extract_strided_slice %31 {offsets = [0, 0], sizes = [8, 32], strides = [1, 1]} : vector<8x48xf32> to vector<8x32xf32>
    %34 = vector.extract_strided_slice %31 {offsets = [0, 32], sizes = [8, 16], strides = [1, 1]} : vector<8x48xf32> to vector<8x16xf32>
    %35 = vector.extract_strided_slice %33 {offsets = [0, 0], sizes = [8, 8], strides = [1, 1]} : vector<8x32xf32> to vector<8x8xf32>
    %36 = vector.extract_strided_slice %33 {offsets = [0, 8], sizes = [8, 8], strides = [1, 1]} : vector<8x32xf32> to vector<8x8xf32>
    %37 = vector.extract_strided_slice %33 {offsets = [0, 16], sizes = [8, 8], strides = [1, 1]} : vector<8x32xf32> to vector<8x8xf32>
    %38 = vector.extract_strided_slice %33 {offsets = [0, 24], sizes = [8, 8], strides = [1, 1]} : vector<8x32xf32> to vector<8x8xf32>
    %39 = vector.shape_cast %35 : vector<8x8xf32> to vector<1x8x8xf32>
    %40 = vector.shape_cast %36 : vector<8x8xf32> to vector<1x8x8xf32>
    %41 = vector.shape_cast %37 : vector<8x8xf32> to vector<1x8x8xf32>
    %42 = vector.shape_cast %38 : vector<8x8xf32> to vector<1x8x8xf32>
    %43 = tpu.concatenate %39, %40, %41, %42 in 0 : vector<1x8x8xf32>, vector<1x8x8xf32>, vector<1x8x8xf32>, vector<1x8x8xf32> -> vector<4x8x8xf32>
    %44 = vector.extract_strided_slice %34 {offsets = [0, 0], sizes = [8, 8], strides = [1, 1]} : vector<8x16xf32> to vector<8x8xf32>
    %45 = vector.extract_strided_slice %34 {offsets = [0, 8], sizes = [8, 8], strides = [1, 1]} : vector<8x16xf32> to vector<8x8xf32>
    %46 = vector.extract_strided_slice %32 {offsets = [0, 0], sizes = [8, 8], strides = [1, 1]} : vector<8x16xf32> to vector<8x8xf32>
    %47 = vector.extract_strided_slice %32 {offsets = [0, 8], sizes = [8, 8], strides = [1, 1]} : vector<8x16xf32> to vector<8x8xf32>
    %48 = vector.shape_cast %44 : vector<8x8xf32> to vector<1x8x8xf32>
    %49 = vector.shape_cast %44 : vector<8x8xf32> to vector<1x8x8xf32>
    %50 = vector.shape_cast %45 : vector<8x8xf32> to vector<1x8x8xf32>
    %51 = vector.shape_cast %45 : vector<8x8xf32> to vector<1x8x8xf32>
    %52 = tpu.concatenate %48, %49, %50, %51 in 0 : vector<1x8x8xf32>, vector<1x8x8xf32>, vector<1x8x8xf32>, vector<1x8x8xf32> -> vector<4x8x8xf32>
    %53 = vector.shape_cast %46 : vector<8x8xf32> to vector<1x8x8xf32>
    %54 = vector.shape_cast %46 : vector<8x8xf32> to vector<1x8x8xf32>
    %55 = vector.shape_cast %47 : vector<8x8xf32> to vector<1x8x8xf32>
    %56 = vector.shape_cast %47 : vector<8x8xf32> to vector<1x8x8xf32>
    %57 = tpu.concatenate %53, %54, %55, %56 in 0 : vector<1x8x8xf32>, vector<1x8x8xf32>, vector<1x8x8xf32>, vector<1x8x8xf32> -> vector<4x8x8xf32>
    "tpu.trace_start"() <{level = 10 : i32, message = "hqd,hkd->hqk"}> : () -> ()
    %cst_16 = arith.constant dense<0.000000e+00> : vector<4x8x8xf32>
    %58 = tpu.matmul %43, %52, %cst_16 {dimension_numbers = #tpu.dot_dimension_numbers<[2], [2], [1], [1], [0, 0, 0, 1, 1, 1], [0], [0]>} : vector<4x8x8xf32>, vector<4x8x8xf32>, vector<4x8x8xf32> -> vector<4x8x8xf32>
    "tpu.trace_stop"() : () -> ()
    %cst_17 = arith.constant 0.353553385 : f32
    %59 = vector.broadcast %cst_17 : f32 to vector<4x8x8xf32>
    %60 = arith.mulf %58, %59 : vector<4x8x8xf32>
    %61 = vector.shape_cast %3 : vector<8x8xf32> to vector<1x8x8xf32>
    %62 = vector.broadcast %61 : vector<1x8x8xf32> to vector<4x8x8xf32>
    %63 = arith.addf %60, %62 : vector<4x8x8xf32>
    %cst_18 = arith.constant dense<0xFF800000> : vector<4x8xf32>
    %64 = vector.multi_reduction <maximumf>, %63, %cst_18 [2] : vector<4x8x8xf32> to vector<4x8xf32>
    %65 = vector.shape_cast %64 : vector<4x8xf32> to vector<4x8x1xf32>
    %66 = vector.broadcast %65 : vector<4x8x1xf32> to vector<4x8x8xf32>
    %67 = arith.subf %63, %66 : vector<4x8x8xf32>
    %68 = math.exp %67 : vector<4x8x8xf32>
    %cst_19 = arith.constant dense<0.000000e+00> : vector<4x8xf32>
    %69 = vector.multi_reduction <add>, %68, %cst_19 [2] : vector<4x8x8xf32> to vector<4x8xf32>
    %70 = vector.shape_cast %69 : vector<4x8xf32> to vector<4x8x1xf32>
    %71 = tpu.reciprocal %70 {approx = true} : vector<4x8x1xf32> -> vector<4x8x1xf32>
    %72 = vector.broadcast %71 : vector<4x8x1xf32> to vector<4x8x8xf32>
    %73 = arith.mulf %68, %72 : vector<4x8x8xf32>
    "tpu.trace_start"() <{level = 10 : i32, message = "hqk,hkd->hqd"}> : () -> ()
    %cst_20 = arith.constant dense<0.000000e+00> : vector<4x8x8xf32>
    %74 = tpu.matmul %73, %57, %cst_20 {dimension_numbers = #tpu.dot_dimension_numbers<[2], [1], [1], [2], [0, 0, 0, 1, 1, 2], [0], [0]>} : vector<4x8x8xf32>, vector<4x8x8xf32>, vector<4x8x8xf32> -> vector<4x8x8xf32>
    "tpu.trace_stop"() : () -> ()
    %75 = vector.extract_strided_slice %74 {offsets = [0, 0, 0], sizes = [1, 8, 8], strides = [1, 1, 1]} : vector<4x8x8xf32> to vector<1x8x8xf32>
    %76 = vector.shape_cast %75 : vector<1x8x8xf32> to vector<8x8xf32>
    %77 = vector.extract_strided_slice %74 {offsets = [1, 0, 0], sizes = [1, 8, 8], strides = [1, 1, 1]} : vector<4x8x8xf32> to vector<1x8x8xf32>
    %78 = vector.shape_cast %77 : vector<1x8x8xf32> to vector<8x8xf32>
    %79 = vector.extract_strided_slice %74 {offsets = [2, 0, 0], sizes = [1, 8, 8], strides = [1, 1, 1]} : vector<4x8x8xf32> to vector<1x8x8xf32>
    %80 = vector.shape_cast %79 : vector<1x8x8xf32> to vector<8x8xf32>
    %81 = vector.extract_strided_slice %74 {offsets = [3, 0, 0], sizes = [1, 8, 8], strides = [1, 1, 1]} : vector<4x8x8xf32> to vector<1x8x8xf32>
    %82 = vector.shape_cast %81 : vector<1x8x8xf32> to vector<8x8xf32>
    %83 = tpu.concatenate %76, %78, %80, %82 in 1 : vector<8x8xf32>, vector<8x8xf32>, vector<8x8xf32>, vector<8x8xf32> -> vector<8x32xf32>
    %c0_21 = arith.constant 0 : index
    %c0_22 = arith.constant 0 : index
    %84 = vector.load %arg5[%c0_21, %c0_22] : memref<32x32xf32, #tpu.memory_space<vmem>>, vector<32x32xf32>
    %cst_23 = arith.constant dense<0.000000e+00> : vector<8x32xf32>
    %85 = tpu.matmul %83, %84, %cst_23 {dimension_numbers = #tpu.dot_dimension_numbers<[1], [0], [0], [1], [0, 0, 1, 1], [], []>} : vector<8x32xf32>, vector<32x32xf32>, vector<8x32xf32> -> vector<8x32xf32>
    %86 = arith.addf %1, %85 : vector<8x32xf32>
    %87 = arith.mulf %86, %86 : vector<8x32xf32>
    %cst_24 = arith.constant dense<0.000000e+00> : vector<8xf32>
    %88 = vector.multi_reduction <add>, %87, %cst_24 [1] : vector<8x32xf32> to vector<8xf32>
    %89 = vector.shape_cast %88 : vector<8xf32> to vector<8x1xf32>
    %cst_25 = arith.constant 3.200000e+01 : f32
    %90 = vector.broadcast %cst_25 : f32 to vector<8x1xf32>
    %91 = arith.divf %89, %90 : vector<8x1xf32>
    %cst_26 = arith.constant 9.99999997E-7 : f32
    %92 = vector.broadcast %cst_26 : f32 to vector<8x1xf32>
    %93 = arith.addf %91, %92 : vector<8x1xf32>
    %94 = math.rsqrt %93 : vector<8x1xf32>
    %95 = vector.broadcast %94 : vector<8x1xf32> to vector<8x32xf32>
    %96 = arith.mulf %86, %95 : vector<8x32xf32>
    %97 = vector.broadcast %12 : vector<1x32xf32> to vector<8x32xf32>
    %98 = arith.mulf %97, %96 : vector<8x32xf32>
    %c0_27 = arith.constant 0 : index
    %c0_28 = arith.constant 0 : index
    %99 = vector.load %arg6[%c0_27, %c0_28] : memref<32x256xf32, #tpu.memory_space<vmem>>, vector<32x256xf32>
    %cst_29 = arith.constant dense<0.000000e+00> : vector<8x256xf32>
    %100 = tpu.matmul %98, %99, %cst_29 {dimension_numbers = #tpu.dot_dimension_numbers<[1], [0], [0], [1], [0, 0, 1, 1], [], []>} : vector<8x32xf32>, vector<32x256xf32>, vector<8x256xf32> -> vector<8x256xf32>
    %101 = vector.extract_strided_slice %100 {offsets = [0, 0], sizes = [8, 128], strides = [1, 1]} : vector<8x256xf32> to vector<8x128xf32>
    %102 = vector.extract_strided_slice %100 {offsets = [0, 128], sizes = [8, 128], strides = [1, 1]} : vector<8x256xf32> to vector<8x128xf32>
    %103 = arith.negf %101 : vector<8x128xf32>
    %104 = math.exp %103 : vector<8x128xf32>
    %cst_30 = arith.constant 1.000000e+00 : f32
    %105 = vector.broadcast %cst_30 : f32 to vector<8x128xf32>
    %106 = arith.addf %105, %104 : vector<8x128xf32>
    %107 = arith.divf %105, %106 : vector<8x128xf32>
    %108 = arith.mulf %101, %107 : vector<8x128xf32>
    %109 = arith.mulf %108, %102 : vector<8x128xf32>
    %c0_31 = arith.constant 0 : index
    %c0_32 = arith.constant 0 : index
    %110 = vector.load %arg7[%c0_31, %c0_32] : memref<128x32xf32, #tpu.memory_space<vmem>>, vector<128x32xf32>
    %cst_33 = arith.constant dense<0.000000e+00> : vector<8x32xf32>
    %111 = tpu.matmul %109, %110, %cst_33 {dimension_numbers = #tpu.dot_dimension_numbers<[1], [0], [0], [1], [0, 0, 1, 1], [], []>} : vector<8x128xf32>, vector<128x32xf32>, vector<8x32xf32> -> vector<8x32xf32>
    %112 = arith.addf %86, %111 : vector<8x32xf32>
    %c0_34 = arith.constant 0 : index
    %c0_35 = arith.constant 0 : index
    %c0_36 = arith.constant 0 : index
    %113 = vector.load %arg9[%c0_34, %c0_35, %c0_36] : memref<1x8x32xf32, #tpu.memory_space<vmem>>, vector<1x8x32xf32>
    %114 = vector.shape_cast %113 : vector<1x8x32xf32> to vector<8x32xf32>
    %115 = vector.shape_cast %112 : vector<8x32xf32> to vector<1x8x32xf32>
    tpu.vector_store %arg9[%c0_34, %c0_35, %c0_36], %115 {strides = array<i32>} : memref<1x8x32xf32, #tpu.memory_space<vmem>>, vector<1x8x32xf32>,
    return
  }
  func.func @transform_0(%arg0: i32) -> (i32, i32, i32) {
    %c0_i32 = arith.constant 0 : i32
    %c0_i32_0 = arith.constant 0 : i32
    %c0_i32_1 = arith.constant 0 : i32
    return %arg0, %c0_i32, %c0_i32_0 : i32, i32, i32
  }
  func.func @transform_1(%arg0: i32) -> (i32, i32, i32) {
    %c0_i32 = arith.constant 0 : i32
    %c0_i32_0 = arith.constant 0 : i32
    %c0_i32_1 = arith.constant 0 : i32
    return %arg0, %c0_i32, %c0_i32_0 : i32, i32, i32
  }
  func.func @transform_2(%arg0: i32) -> (i32, i32, i32, i32) {
    %c0_i32 = arith.constant 0 : i32
    %c0_i32_0 = arith.constant 0 : i32
    %c0_i32_1 = arith.constant 0 : i32
    %c0_i32_2 = arith.constant 0 : i32
    return %arg0, %c0_i32, %c0_i32_0, %c0_i32_1 : i32, i32, i32, i32
  }
  func.func @transform_3(%arg0: i32) -> (i32, i32) {
    %c0_i32 = arith.constant 0 : i32
    %c0_i32_0 = arith.constant 0 : i32
    %c0_i32_1 = arith.constant 0 : i32
    return %c0_i32, %c0_i32_0 : i32, i32
  }
  func.func @transform_4(%arg0: i32) -> (i32, i32) {
    %c0_i32 = arith.constant 0 : i32
    %c0_i32_0 = arith.constant 0 : i32
    %c0_i32_1 = arith.constant 0 : i32
    return %c0_i32, %c0_i32_0 : i32, i32
  }
  func.func @transform_5(%arg0: i32) -> (i32, i32) {
    %c0_i32 = arith.constant 0 : i32
    %c0_i32_0 = arith.constant 0 : i32
    %c0_i32_1 = arith.constant 0 : i32
    return %c0_i32, %c0_i32_0 : i32, i32
  }
  func.func @transform_6(%arg0: i32) -> (i32, i32) {
    %c0_i32 = arith.constant 0 : i32
    %c0_i32_0 = arith.constant 0 : i32
    %c0_i32_1 = arith.constant 0 : i32
    return %c0_i32, %c0_i32_0 : i32, i32
  }
  func.func @transform_7(%arg0: i32) -> (i32, i32) {
    %c0_i32 = arith.constant 0 : i32
    %c0_i32_0 = arith.constant 0 : i32
    %c0_i32_1 = arith.constant 0 : i32
    return %c0_i32, %c0_i32_0 : i32, i32
  }
  func.func @transform_8(%arg0: i32) -> (i32, i32, i32) {
    %c0_i32 = arith.constant 0 : i32
    %c0_i32_0 = arith.constant 0 : i32
    %c0_i32_1 = arith.constant 0 : i32
    return %arg0, %c0_i32, %c0_i32_0 : i32, i32, i32
  }
}

</mosaic_0001>

<bundles_post_ra>
// kernel: tpu_custom_call.1
= control target key start
LH: loop header
LB: loop body
LE: loop exit
PB: predicated region body
PF: predicated region fallthrough
CT: control target
= control target key end

     0   :  { %s2458_s0 = inlined_call_operand.hbm [shape: f32[2,8,32], index: 0, kind: input, shape index: {}]   ;;  %s2459_s1 = inlined_call_operand.hbm [shape: f32[2,8,8], index: 1, kind: input, shape index: {}]   ;;  %s2460_s2 = inlined_call_operand.vmem [shape: f32[2,2,8,48], index: 2, kind: input, shape index: {}]   ;;  %s2461_s3 = inlined_call_operand.vmem [shape: f32[32,112], index: 3, kind: input, shape index: {}]   ;;  %s2462_s4 = inlined_call_operand.vmem [shape: f32[32,32], index: 4, kind: input, shape index: {}]   ;;  %s2463_s5 = inlined_call_operand.vmem [shape: f32[32,256], index: 5, kind: input, shape index: {}]   ;;  %s2464_s6 = inlined_call_operand.vmem [shape: f32[128,32], index: 6, kind: input, shape index: {}]   ;;  %s2465_s7 = inlined_call_operand.vmem [shape: f32[2,32], index: 7, kind: input, shape index: {}]   ;;  %s2466_s8 = inlined_call_operand.hbm [shape: f32[2,8,32], index: 8, kind: output, shape index: {}]  }
   0x1   :  { %2471 = sst [smem:[#allocation12_spill]] %s2458_s0 }
   0x2   :  { %13 = vsyncpa [#allocation3], 0 }
   0x3   :  { %15 = vsyncpa [#allocation3 + $0x1], 0 }
   0x4   :  { %16 = vsyncpa [#allocation6], 0 }
   0x5   :  { %18 = vsyncpa [#allocation6 + $0x1], 0 }
   0x6   :  { %19 = vsyncpa [#allocation4], 0 }
   0x7   :  { %21 = vsyncpa [#allocation4 + $0x1], 0  ;;  %s2045_s27 = smov 0   ;;  %s2047_s28 = smov 0  }
   0x8   :  { %s2049_s29 = smov 0   ;;  %s2051_s30 = smov 0  }
   0x9 LB: > { %s2066_s9 = sadd.s32 4294967295, %s1983_s30   ;;  %s1548_s10 = sadd.s32 4294967294, %s1983_s30   ;;  %s1983_s30 = sphi %s2051_s30, %s2493_s30   ;;  %s1979_s29 = sphi %s2049_s29, %s2492_s29   ;;  %s1975_s28 = sphi %s2047_s28, %s2491_s28   ;;  %s1971_s27 = sphi %s2045_s27, %s2490_s27  }
   0xa   : > { %s2070_s11 = sadd.s32 1, %s1983_s30   ;;  %s34_s12 = sadd.s32 1, %s1979_s29 }
   0xb   : > { %s31_s13 = ssub.s32 %s1983_s30, %s2070_s11  ;;  %p41_p0 = scmp.ne.s32.totalorder %s1979_s29, %s1975_s28 }
   0xc   : > { %p32_p1 = scmp.eq.s32.totalorder %s31_s13, 0  ;;  %p42_p2 = scmp.eq.s32.totalorder %s1983_s30, 0 }
   0xd   : > { %p47_p3 = scmp.ne.s32.totalorder %s1975_s28, %s1971_s27  ;;  %p48_p4 = scmp.eq.s32.totalorder %s2066_s9, 0 }
   0xe   : > { %s2082_s14 = scalar_select %p32_p1, %s1979_s29, %s34_s12  }
   0xf   : > { %p2084_p5 = por %p42_p2, %p41_p0  ;;  %p2088_p6 = por %p48_p4, %p47_p3 }
  0x10   : > { %2472 = sst [smem:[#allocation11_spill]] %s2082_s14  ;;  %p228_p7 = scmp.eq.s32.totalorder %s2066_s9, 1 }
  0x11   : > { %s2474_s16 = scalar_select %p2088_p6, 1, 0 }
  0x12   : > { %p234_p8 = scmp.eq.s32.totalorder %s1548_s10, 1  ;;  %p1783_p10 = scmp.lt.s32.totalorder %s1983_s30, 2 }
  0x13   : > { %p2095_p11 = por %p228_p7, %p41_p0  ;;  %s2104_s19 = sand.u32 1, %s1979_s29  }
  0x14   : > { %p2099_p12 = por %p234_p8, %p47_p3  ;;  %s2468_s20 = sshll.u32 %s1983_s30, 7 }
  0x15   : > { %s2475_s17 = scalar_select %p2095_p11, 1, 0 }
  0x16   : > { %s2476_s18 = scalar_select %p2099_p12, 1, 0 }
  0x17   : > { %s2467_s21 = sshll.u32 %s2104_s19, 3  ;;  %s2477_s0 = sld [smem:[#allocation12_spill]] }
  0x18   : > { %s273_s25 = scalar_lea.vmem [#allocation2], %s2467_s21  ;;  %p2119_p13 = pnand %p1783_p10, %p2084_p5 }
  0x19   : > { %s280_s26 = sshll.u32 %s273_s25, 4  ;;  %s270_s12 = scalar_lea.sflag [#allocation3], %s2104_s19  ;;  %s2123_s26 = int_to_ptr.vmem [resolvable:$true] %s280_s26 }
  0x1a   : > { %p1855_p3 = pneg %p2119_p13 }
  0x1d   : > { %s2113_s24 = scalar_lea.hbm %s2477_s0, %s2468_s20  ;;  %s1858_s23 = scalar_lea.hbm %s2477_s0, 256 }
  0x1e   : > { %s1853_s13 = scalar_lea.hbm %s2113_s24, 128  ;;  %p1859_p5 = scmp.lt.u32.totalorder %s2113_s24, %s2477_s0 }
  0x1f   : > { %p1854_p2 = scmp.ne.s32.totalorder %s2113_s24, %s1853_s13  ;;  %p1860_p8 = scmp.lt.u32.totalorder %s1858_s23, %s1853_s13 }
  0x20   : > { %p1862_p9 = scmp.lt.u32.totalorder %s1853_s13, %s2113_s24 }
  0x21   : > { %p1856_p4 = pnand %p1855_p3, %p1854_p2  ;;  %p1861_p10 = por %p1860_p8, %p1859_p5 }
  0x23   : > { %p1857_p7 = pneg %p1856_p4  ;;  %p1863_p0 = por %p1862_p9, %p1861_p10 }
  0x25   : > { %p1864_p1 = pnand %p1863_p0, %p1857_p7 }
  0x27   : > { %1867 = shalt.err (!%p1864_p1)
}
  0x28   : > { %s1868_s20 = scalar_lea.vmem %s2123_s26, 128  ;;  %s1985_s15 = smov [#allocation2]  }
  0x29   : > { %p1869_p2 = scmp.ne.s32.totalorder %s2123_s26, %s1868_s20  ;;  %s1873_s22 = sshll.u32 %s1985_s15, 4  ;;  %s1874_s22 = int_to_ptr.vmem [resolvable:$false] %s1873_s22 }
  0x2a   : > { %s1875_s21 = scalar_lea.vmem %s1874_s22, 256  ;;  %p1876_p11 = scmp.lt.s32.totalorder %s2123_s26, %s1874_s22 }
  0x2b   : > { %p1871_p4 = pnand %p1869_p2, %p1855_p3  ;;  %p1877_p5 = scmp.lt.s32.totalorder %s1875_s21, %s1868_s20 }
  0x2d   : > { %p1872_p12 = pneg %p1871_p4  ;;  %p1878_p8 = por %p1877_p5, %p1876_p11 }
  0x2f   : > { %p1879_p9 = pnand %p1878_p8, %p1872_p12 }
  0x31   : > { %1882 = shalt.err (!%p1879_p9)
}
  0x32   : > { %1775 = dma.hbm_to_vmem [thread:$0]  (!%p2119_p13), %s2113_s24, 128, %s2123_s26, %s270_s12  }
  0x33   : > { %p2479_p0 = scmp.lt.s32.totalorder %s1983_s30, 3  ;;  %p2480_p1 = scmp.ge.s32.totalorder %s1983_s30, 1 }
  0x34   : > { %s2482_s20 = sshll.u32 %s1983_s30, 7  ;;  %s2483_s22 = sshll.u32 %s2104_s19, 3 }
  0x35   : > { %p2157_p7 = pnand %p2480_p1, %p2479_p0  ;;  %s2166_s15 = scalar_lea.hbm %s2459_s1, %s2482_s20 }
  0x36   : > { %s291_s21 = scalar_lea.vmem [#allocation5], %s2483_s22  ;;  %s288_s24 = scalar_lea.sflag [#allocation6], %s2104_s19 }
  0x37   : > { %s2481_s13 = scalar_select %p2157_p7, 1, 0 }
  0x38   : > { %s298_s0 = sshll.u32 %s291_s21, 4  ;;  %s1883_s26 = scalar_lea.hbm %s2166_s15, 128  ;;  %s299_s0 = int_to_ptr.vmem [resolvable:$true] %s298_s0 }
  0x39   : > { %p1884_p11 = scmp.ne.s32.totalorder %s2166_s15, %s1883_s26  ;;  %s1888_s20 = scalar_lea.hbm %s2459_s1, 256 }
  0x3a   : > { %p1889_p2 = scmp.lt.u32.totalorder %s2166_s15, %s2459_s1  ;;  %p1890_p4 = scmp.lt.u32.totalorder %s1888_s20, %s1883_s26 }
  0x3b   : > { %p1886_p12 = pnand %p1884_p11, %p1855_p3  ;;  %p1892_p8 = scmp.lt.u32.totalorder %s1883_s26, %s2166_s15 }
  0x3c   : > { %p1891_p5 = por %p1890_p4, %p1889_p2 }
  0x3d   : > { %p1887_p10 = pneg %p1886_p12 }
  0x3e   : > { %p1893_p9 = por %p1892_p8, %p1891_p5 }
  0x40   : > { %p1894_p0 = pnand %p1893_p9, %p1887_p10 }
  0x42   : > { %1897 = shalt.err (!%p1894_p0)
}
  0x43   : > { %s1898_s19 = scalar_lea.vmem %s299_s0, 128  ;;  %s1986_s22 = smov [#allocation5]  }
  0x44   : > { %p1899_p1 = scmp.ne.s32.totalorder %s299_s0, %s1898_s19  ;;  %s1903_s14 = sshll.u32 %s1986_s22, 4  ;;  %s1904_s14 = int_to_ptr.vmem [resolvable:$false] %s1903_s14 }
  0x45   : > { %s1905_s21 = scalar_lea.vmem %s1904_s14, 256  ;;  %p1906_p6 = scmp.lt.s32.totalorder %s299_s0, %s1904_s14 }
  0x46   : > { %p1901_p11 = pnand %p1899_p1, %p1855_p3  ;;  %p1907_p7 = scmp.lt.s32.totalorder %s1905_s21, %s1898_s19 }
  0x48   : > { %p1902_p12 = pneg %p1901_p11  ;;  %p1908_p2 = por %p1907_p7, %p1906_p6 }
  0x4a   : > { %p1909_p4 = pnand %p1908_p2, %p1902_p12 }
  0x4c   : > { %1912 = shalt.err (!%p1909_p4)
}
  0x4d   : > { %1778 = dma.hbm_to_vmem [thread:$0]  (!%p2119_p13), %s2166_s15, 128, %s299_s0, %s288_s24  }
  0x4e   : > { %p2484_p10 = scmp.ne.s32.totalorder %s2481_s13, 0 }
  0x4f   : > { %s2193_s26 = sand.u32 (!%p2484_p10), 1, %s1975_s28   ;;  %p2485_p6 = scmp.ne.s32.totalorder (!%p2484_p10), %s2474_s16, 0 }
  0x50   : > { %315 = sbr.rel (%p2484_p10) target bundleno = 2529 (0x9e1), region = 52  ;;  %s2196_s12 = sshll.u32 (!%p2484_p10), %s2193_s26, 3 }
  0x51   : > { %s318_s20 = scalar_lea.sflag (!%p2484_p10), [#allocation3], %s2193_s26  ;;  %s321_s23 = scalar_lea.vmem (!%p2484_p10), [#allocation2], %s2196_s12 }
  0x57   : > { %1958 = dma.done.wait (%p2485_p6), %s318_s20, 128  }
  0x58   : > { %1960 = vsyncadd (%p2485_p6), %s318_s20, 4294967168  ;;  %s327_s0 = scalar_lea.sflag [#allocation6], %s2193_s26  ;;  %s330_s10 = scalar_lea.vmem [#allocation5], %s2196_s12 }
  0x59   : > { %1962 = dma.done.wait (%p2485_p6), %s327_s0, 128  }
  0x5a   : > { %1964 = vsyncadd (%p2485_p6), %s327_s0, 4294967168  ;;  %v2210_v0 = vld [vmem:[%s321_s23] sm:$0xff]  ;;  %vm384_vm0 = vcmask 261120   ;;  %v400_v5 = vld [vmem:[%s2461_s3 + $0x10] sm:$0xff]  ;;  %v1987_v6 = vmov 0.0|0.0   ;;  %vm1988_vm1 = vmmov 0   ;;  %v393_v11 = vlaneseq }
  0x5b   : > { %v383_v1 = vmul.f32 %v2210_v0, %v2210_v0  ;;  %v398_v3 = vld [vmem:[%s2461_s3] sm:$0xff]  ;;  %v399_v4 = vld [vmem:[%s2461_s3 + $0x8] sm:$0xff]  ;;  %1722 = vmatprep.subr.bf16.mxu1 %v1987_v6  ;;  %v401_v8 = vld [vmem:[%s2461_s3 + $0x18] sm:$0xff]  ;;  %v1989_v9 = vmov 0.0   ;;  %p373_p13 = scmp.lt.s32.totalorder %s2066_s9, 1  ;;  %s1990_s25 = smov 64  }
  0x5c   : > { %v1723_v7 = vpack.c.bf16 %v399_v4, %v398_v3  ;;  %1633 = vmatprep.mubr.msk.f32.mxu1 %vm1988_vm1, %v1989_v9  ;;  %1646 = vmatprep.subr.mxu0 %v1989_v9  ;;  %v1726_v10 = vpack.c.bf16 %v401_v8, %v400_v5  ;;  %v394_v12 = vshrl.u32 %v393_v11, 7  ;;  %v382_v14 = vld [vmem:[%s2465_s7] sm:$0x3]  ;;  %s1991_s19 = smov 120   ;;  %s1992_s16 = smov 96   ;;  %vm498_vm2 = vcmask 64512  }
  0x5d   : > { %v385_v2 = vsel %vm384_vm0, %v383_v1, 0.0  ;;  %1648 = vmatprep.mubr.msk.f32.mxu0 %vm1988_vm1, %v1989_v9  ;;  %s374_s23 = scalar_select %p373_p13, %s2066_s9, 1  ;;  %v379_v39 = vld [vmem:[%s330_s10] sm:$0xff]  ;;  %vm1156_vm3 = vcmask 130048   ;;  %vm1158_vm4 = vcmask 195584  }
  0x5e   : > { %386 = vadd.xlane.f32.xlu0 %v385_v2  ;;  %1724 = vmatpush3.bf16.msra.mxu1 %v1723_v7  ;;  %v1248_v13 = vsub.s32 1, %v394_v12  ;;  %v395_v20 = vsub.s32 0, %v394_v12  ;;  %s1993_s22 = smov 112   ;;  %s1994_s14 = smov 104  }
  0x5f   : > { %1725 = vmatprep.subr.bf16.mxu1 %v1987_v6  ;;  %s1581_s0 = sshll.u32 %s374_s23, 4  ;;  %s1995_s10 = smov 80  }
  0x60   : > { %v2239_v15 = vrot.slane %v382_v14, %v1248_v13  ;;  %s377_s24 = scalar_lea.vmem %s2460_s2, %s1581_s0  ;;  %v396_v21 = vrot.slane %v382_v14, %v395_v20  ;;  %s1430_s21 = scalar_lea.sflag [#allocation4], %s2193_s26 }
  0x61   : > { %v381_v16 = vld [vmem:[%s377_s24 + $0x8] sm:$0xff]  ;;  %v380_v29 = vld [vmem:[%s377_s24] sm:$0xff]  ;;  %p2486_p7 = scmp.ne.s32.totalorder %s2475_s17, 0 }
  0x62   : > { %1727 = vmatpush3.bf16.msra.mxu1 %v1726_v10 }
  0x63   : > { %1636 = vmatprep.subr.mxu1 %v1989_v9 }
  0x74   : > { %477 = vrot.lane.b32.xlu0 %v381_v16, %s1990_s25 }
  0xeb   : > { %v387_v17 = vpop.xlane.xlu0 %386 }
  0xec   : > { %v389_v18 = vmul.f32 0.03125, %v387_v17 }
  0xee   : > { %v390_v19 = vadd.f32 1e-06, %v389_v18 }
  0xef   : > { %v478_v25 = vpop.permute.xlu0 %477 }
  0xf0   : > { %1829 = vrsqrt.f32 %v390_v19 }
  0xfa   : > { %v1830_v22 = vpop.eup %1829 }
  0xfb   : > { %v392_v23 = vmul.f32 %v1830_v22, %v2210_v0 }
  0xfd   : > { %v397_v24 = vmul.f32 %v396_v21, %v392_v23 }
  0xff   : > { %1634 = vmatmul.mubr.msk.f32.vlgmr.msra.gmra.mrb[0].mxu1 %vm384_vm0, %v397_v24 }
 0x100   : > { %1638 = vmatprep.mubr.msk.f32.mxu1 %vm1988_vm1, %v1989_v9 }
 0x1d2   : > { %v2249_v26 = vpop.f32.mrb[0].mxu1 }
 0x1d3   : > { %v480_v27 = vmul.f32 %v478_v25, %v2249_v26  ;;  %v1635_v28 = vpop.f32.mrb[1].mxu1  ;;  %v475_v30 = vmul.f32 %v2249_v26, %v380_v29 }
 0x1d5   : > { %482 = vrot.lane.b32.xlu1 %v480_v27, %s1990_s25  ;;  %s1578_s25 = sshll.u32 %s2066_s9, 7 }
 0x247   : > { %v483_v31 = vpop.permute.xlu1 %482 }
 0x248   : > { %v485_v32 = vadd.f32 %v483_v31, %v475_v30 }
 0x24a   : > { %487 = vrot.lane.b32.xlu1 %v485_v32, %s1991_s19 }
 0x24e   : > { %496 = vrot.lane.b32.xlu1 %v485_v32, %s1992_s16 }
 0x252   : > { %489 = vrot.lane.b32.xlu1 %v485_v32, %s1993_s22  ;;  %s1998_s22 = smov 24  }
 0x2bc   : > { %v488_v33 = vpop.permute.xlu1 %487 }
 0x2bd   : > { %645 = vrot.lane.b32.xlu1 %v488_v33, %s1992_s16  ;;  %s1997_s16 = smov 16  }
 0x2c0   : > { %v497_v34 = vpop.permute.xlu1 %496 }
 0x2c1   : > { %491 = vrot.lane.b32.xlu1 %v485_v32, %s1994_s14  ;;  %1637 = vmatpush3.xpose.msk.msra.mxu1 %vm498_vm2, %v497_v34 }
 0x2c2   : > { %1641 = vmatprep.subr.mxu1 %v1989_v9 }
 0x2c4   : > { %1639 = vmatmul.mubr.msk.f32.vlgmr.msra.gmra.mrb[2].mxu1 %vm498_vm2, %v485_v32  ;;  %v490_v35 = vpop.permute.xlu1 %489 }
 0x2c5   : > { %1642 = vmatpush3.xpose.msk.msra.mxu1 %vm498_vm2, %v497_v34  ;;  %1643 = vmatprep.mubr.msk.f32.mxu1 %vm1988_vm1, %v1989_v9  ;;  %v1160_v34 = vld [vmem:[%s2462_s4] sm:$0xff] }
 0x2c6   : > { %1651 = vmatprep.subr.mxu1 %v1989_v9 }
 0x2c8   : > { %1644 = vmatmul.mubr.msk.f32.vlgmr.msra.gmra.mrb[4].mxu1 %vm498_vm2, %v488_v33 }
 0x2c9   : > { %1653 = vmatprep.mubr.msk.f32.mxu1 %vm1988_vm1, %v1989_v9 }
 0x32f   : > { %v646_v36 = vpop.permute.xlu1 %645 }
 0x330   : > { %1647 = vmatpush3.xpose.msk.msra.mxu0 %vm498_vm2, %v646_v36  ;;  %1652 = vmatpush3.xpose.msk.msra.mxu1 %vm498_vm2, %v646_v36 }
 0x331   : > { %1656 = vmatprep.subr.mxu0 %v1989_v9  ;;  %1661 = vmatprep.subr.mxu1 %v1989_v9 }
 0x333   : > { %1649 = vmatmul.mubr.msk.f32.vlgmr.msra.gmra.mrb[0].mxu0 %vm498_vm2, %v490_v35  ;;  %v492_v37 = vpop.permute.xlu1 %491  ;;  %v1161_v35 = vld [vmem:[%s2462_s4 + $0x8] sm:$0xff] }
 0x334   : > { %1654 = vmatmul.mubr.msk.f32.vlgmr.msra.gmra.mrb[6].mxu1 %vm498_vm2, %v492_v37  ;;  %1658 = vmatprep.mubr.msk.f32.mxu0 %vm1988_vm1, %v1989_v9  ;;  %v1729_v36 = vpack.c.bf16 %v1161_v35, %v1160_v34  ;;  %v1162_v37 = vld [vmem:[%s2462_s4 + $0x10] sm:$0xff] }
 0x335   : > { %1663 = vmatprep.mubr.msk.f32.mxu1 %vm1988_vm1, %v1989_v9  ;;  %v1355_v35 = vld [vmem:[%s2464_s6 + $0x70] sm:$0xff] }
 0x397   : > { %v569_v38 = vpop.f32.mrb[2].mxu1 }
 0x398   : > { %v793_v40 = vmul.f32 0.35355338, %v569_v38  ;;  %v1640_v41 = vpop.f32.mrb[3].mxu1  ;;  %v1163_v38 = vld [vmem:[%s2462_s4 + $0x18] sm:$0xff] }
 0x39a   : > { %v797_v42 = vadd.f32 %v793_v40, %v379_v39 }
 0x39b   : > { %v641_v43 = vpop.f32.mrb[4].mxu1 }
 0x39c   : > { %v794_v44 = vmul.f32 0.35355338, %v641_v43  ;;  %v1645_v45 = vpop.f32.mrb[5].mxu1  ;;  %v801_v46 = vsel %vm498_vm2, %v797_v42, -inf }
 0x39d   : > { %802 = vmax.xlane.f32.xlu1 %v801_v46 }
 0x39e   : > { %v798_v47 = vadd.f32 %v794_v44, %v379_v39 }
 0x3a0   : > { %v804_v48 = vsel %vm498_vm2, %v798_v47, -inf }
 0x3a1   : > { %805 = vmax.xlane.f32.xlu0 %v804_v48 }
 0x406   : > { %v717_v49 = vpop.f32.mrb[0].mxu0 }
 0x407   : > { %v795_v50 = vmul.f32 0.35355338, %v717_v49  ;;  %v1650_v51 = vpop.f32.mrb[1].mxu0  ;;  %v789_v52 = vpop.f32.mrb[6].mxu1 }
 0x408   : > { %v796_v53 = vmul.f32 0.35355338, %v789_v52  ;;  %v1655_v54 = vpop.f32.mrb[7].mxu1 }
 0x409   : > { %v799_v55 = vadd.f32 %v795_v50, %v379_v39 }
 0x40a   : > { %v800_v56 = vadd.f32 %v796_v53, %v379_v39  ;;  %v1732_v39 = vpack.c.bf16 %v1163_v38, %v1162_v37 }
 0x40b   : > { %v807_v57 = vsel %vm498_vm2, %v799_v55, -inf }
 0x40c   : > { %808 = vmax.xlane.f32.xlu0 %v807_v57  ;;  %v810_v58 = vsel %vm498_vm2, %v800_v56, -inf }
 0x40d   : > { %811 = vmax.xlane.f32.xlu1 %v810_v58 }
 0x422   : > { %494 = vrot.lane.b32.xlu0 %v2249_v26, %s1991_s19  ;;  %s1996_s19 = smov 8  }
 0x42a   : > { %v803_v59 = vpop.xlane.xlu1 %802 }
 0x42b   : > { %v813_v60 = vsub.f32 %v797_v42, %v803_v59  ;;  %v1252_v59 = vld [vmem:[%s2463_s5 + $0x8] sm:$0xff] }
 0x42d   : > { %v817_v61 = vmul.f32 1.442695, %v813_v60  ;;  %v1254_v60 = vld [vmem:[%s2463_s5 + $0x18] sm:$0xff] }
 0x42e   : > { %v806_v62 = vpop.xlane.xlu0 %805 }
 0x42f   : > { %1831 = vpow2.f32 %v817_v61  ;;  %v814_v63 = vsub.f32 %v798_v47, %v806_v62  ;;  %v1253_v61 = vld [vmem:[%s2463_s5 + $0x10] sm:$0xff] }
 0x431   : > { %v819_v1 = vmul.f32 1.442695, %v814_v63  ;;  %v1256_v63 = vld [vmem:[%s2463_s5 + $0x28] sm:$0xff] }
 0x433   : > { %1833 = vpow2.f32 %v819_v1  ;;  %v1258_v1 = vld [vmem:[%s2463_s5 + $0x38] sm:$0xff] }
 0x439   : > { %v1832_v2 = vpop.eup %1831 }
 0x43a   : > { %v825_v3 = vsel %vm498_vm2, %v1832_v2, 0.0 }
 0x43b   : > { %826 = vadd.xlane.f32.xlu1 %v825_v3  ;;  %v1255_v3 = vld [vmem:[%s2463_s5 + $0x20] sm:$0xff] }
 0x43d   : > { %v1834_v4 = vpop.eup %1833 }
 0x43e   : > { %v828_v5 = vsel %vm498_vm2, %v1834_v4, 0.0 }
 0x43f   : > { %829 = vadd.xlane.f32.xlu1 %v828_v5 }
 0x499   : > { %v809_v7 = vpop.xlane.xlu0 %808 }
 0x49a   : > { %v815_v8 = vsub.f32 %v799_v55, %v809_v7  ;;  %v812_v10 = vpop.xlane.xlu1 %811 }
 0x49b   : > { %v816_v11 = vsub.f32 %v800_v56, %v812_v10 }
 0x49c   : > { %v821_v12 = vmul.f32 1.442695, %v815_v8 }
 0x49d   : > { %v823_v13 = vmul.f32 1.442695, %v816_v11  ;;  %v495_v14 = vpop.permute.xlu0 %494 }
 0x49e   : > { %1835 = vpow2.f32 %v821_v12  ;;  %994 = vrot.lane.b32.xlu0 %v495_v14, %s1995_s10  ;;  %v1341_v14 = vld [vmem:[%s2464_s6] sm:$0xff] }
 0x49f   : > { %1837 = vpow2.f32 %v823_v13 }
 0x4a8   : > { %v1836_v16 = vpop.eup %1835 }
 0x4a9   : > { %v831_v17 = vsel %vm498_vm2, %v1836_v16, 0.0  ;;  %v1838_v18 = vpop.eup %1837 }
 0x4aa   : > { %832 = vadd.xlane.f32.xlu1 %v831_v17  ;;  %v834_v19 = vsel %vm498_vm2, %v1838_v18, 0.0 }
 0x4ae   : > { %835 = vadd.xlane.f32.xlu1 %v834_v19 }
 0x4bf   : > { %845 = vrot.lane.b32.xlu1 %v2249_v26, %s1995_s10  ;;  %s2413_s10 = scalar_lea.hbm %s2466_s8, %s1578_s25 }
 0x4c8   : > { %v827_v20 = vpop.xlane.xlu1 %826 }
 0x4c9   : > { %1839 = vrcp.f32 %v827_v20  ;;  %v1345_v20 = vld [vmem:[%s2464_s6 + $0x20] sm:$0xff] }
 0x4cc   : > { %v830_v21 = vpop.xlane.xlu1 %829 }
 0x4cd   : > { %1841 = vrcp.f32 %v830_v21  ;;  %v1346_v21 = vld [vmem:[%s2464_s6 + $0x28] sm:$0xff] }
 0x4d3   : > { %v1840_v23 = vpop.eup %1839 }
 0x4d4   : > { %v841_v27 = vmul.f32 %v1840_v23, %v1832_v2  ;;  %v1738_v2 = vpack.c.bf16 %v1258_v1, %v1256_v63  ;;  %v1347_v23 = vld [vmem:[%s2464_s6 + $0x30] sm:$0xff] }
 0x4d7   : > { %v1842_v25 = vpop.eup %1841 }
 0x4d8   : > { %v842_v28 = vmul.f32 %v1842_v25, %v1834_v4  ;;  %v1257_v4 = vld [vmem:[%s2463_s5 + $0x30] sm:$0xff] }
 0x4d9   : > { %v1740_v5 = vpack.c.bf16 %v1257_v4, %v1255_v3 }
 0x510   : > { %v995_v30 = vpop.permute.xlu0 %994 }
 0x537   : > { %v833_v22 = vpop.xlane.xlu1 %832 }
 0x538   : > { %1843 = vrcp.f32 %v833_v22  ;;  %v1749_v22 = vpack.c.bf16 %v1346_v21, %v1345_v20 }
 0x53b   : > { %v836_v24 = vpop.xlane.xlu1 %835 }
 0x53c   : > { %1845 = vrcp.f32 %v836_v24  ;;  %v1348_v24 = vld [vmem:[%s2464_s6 + $0x38] sm:$0xff] }
 0x53d   : > { %v1752_v25 = vpack.c.bf16 %v1348_v24, %v1347_v23 }
 0x53f   : > { %v846_v29 = vpop.permute.xlu1 %845 }
 0x540   : > { %1657 = vmatpush3.msra.mxu0 %v846_v29  ;;  %1662 = vmatpush3.msra.mxu1 %v846_v29 }
 0x541   : > { %1659 = vmatmul.mubr.msk.f32.vlgmr.msra.gmra.mrb[2].mxu0 %vm498_vm2, %v841_v27  ;;  %1664 = vmatmul.mubr.msk.f32.vlgmr.msra.gmra.mrb[8].mxu1 %vm498_vm2, %v842_v28  ;;  %v1349_v27 = vld [vmem:[%s2464_s6 + $0x40] sm:$0xff]  ;;  %v1350_v28 = vld [vmem:[%s2464_s6 + $0x48] sm:$0xff] }
 0x542   : > { %v1844_v26 = vpop.eup %1843  ;;  %1666 = vmatprep.subr.mxu0 %v1989_v9  ;;  %1671 = vmatprep.subr.mxu1 %v1989_v9  ;;  %v1755_v29 = vpack.c.bf16 %v1350_v28, %v1349_v27 }
 0x543   : > { %v843_v31 = vmul.f32 %v1844_v26, %v1836_v16  ;;  %1667 = vmatpush3.msra.mxu0 %v995_v30  ;;  %1672 = vmatpush3.msra.mxu1 %v995_v30  ;;  %v1342_v16 = vld [vmem:[%s2464_s6 + $0x8] sm:$0xff]  ;;  %v1351_v26 = vld [vmem:[%s2464_s6 + $0x50] sm:$0xff]  ;;  %v1352_v30 = vld [vmem:[%s2464_s6 + $0x58] sm:$0xff] }
 0x544   : > { %1668 = vmatprep.mubr.msk.f32.mxu0 %vm1988_vm1, %v1989_v9  ;;  %1673 = vmatprep.mubr.msk.f32.mxu1 %vm1988_vm1, %v1989_v9  ;;  %v1743_v17 = vpack.c.bf16 %v1342_v16, %v1341_v14 }
 0x545   : > { %1669 = vmatmul.mubr.msk.f32.vlgmr.msra.gmra.mrb[4].mxu0 %vm498_vm2, %v843_v31  ;;  %1728 = vmatprep.subr.bf16.mxu1 %v1987_v6  ;;  %v1758_v31 = vpack.c.bf16 %v1352_v30, %v1351_v26 }
 0x546   : > { %v1846_v32 = vpop.eup %1845  ;;  %1742 = vmatprep.subr.bf16.mxu0 %v1987_v6  ;;  %1719 = vmatprep.mubr.msk.f32.mxu0 %vm1988_vm1, %v1989_v9 }
 0x547   : > { %v844_v33 = vmul.f32 %v1846_v32, %v1838_v18  ;;  %1744 = vmatpush3.bf16.msra.mxu0 %v1743_v17  ;;  %v1343_v18 = vld [vmem:[%s2464_s6 + $0x10] sm:$0xff]  ;;  %v1353_v32 = vld [vmem:[%s2464_s6 + $0x60] sm:$0xff] }
 0x548   : > { %1745 = vmatprep.subr.bf16.mxu0 %v1987_v6 }
 0x549   : > { %1674 = vmatmul.mubr.msk.f32.vlgmr.msra.gmra.mrb[10].mxu1 %vm498_vm2, %v844_v33  ;;  %v1354_v33 = vld [vmem:[%s2464_s6 + $0x68] sm:$0xff] }
 0x54a   : > { %1684 = vmatprep.mubr.msk.f32.mxu1 %vm1988_vm1, %v1989_v9  ;;  %1730 = vmatpush3.bf16.msra.mxu1 %v1729_v36  ;;  %v1761_v34 = vpack.c.bf16 %v1354_v33, %v1353_v32  ;;  %v1356_v36 = vld [vmem:[%s2464_s6 + $0x78] sm:$0xff] }
 0x54b   : > { %1731 = vmatprep.subr.bf16.mxu1 %v1987_v6  ;;  %v1764_v37 = vpack.c.bf16 %v1356_v36, %v1355_v35 }
 0x54e   : > { %1733 = vmatpush3.bf16.msra.mxu1 %v1732_v39 }
 0x614   : > { %v917_v40 = vpop.f32.mrb[2].mxu0  ;;  %v990_v41 = vpop.f32.mrb[8].mxu1 }
 0x615   : > { %1144 = vrot.lane.b32.xlu0 %v990_v41, %s1996_s19  ;;  %v1660_v42 = vpop.f32.mrb[3].mxu0  ;;  %v1665_v43 = vpop.f32.mrb[9].mxu1  ;;  %s372_s19 = scalar_lea.vmem [#allocation7], %s2196_s12  ;;  %s1999_s12 = smov [#allocation7]  }
 0x616   : > { %s1917_s20 = sshll.u32 %s1999_s12, 4  ;;  %s1918_s20 = int_to_ptr.vmem [resolvable:$false] %s1917_s20 }
 0x617   : > { %s1919_s23 = scalar_lea.vmem %s1918_s20, 256 }
 0x618   : > { %v1066_v44 = vpop.f32.mrb[4].mxu0 }
 0x619   : > { %1148 = vrot.lane.b32.xlu0 %v1066_v44, %s1997_s16  ;;  %v1670_v45 = vpop.f32.mrb[5].mxu0  ;;  %s1443_s16 = sshll.u32 %s372_s19, 4  ;;  %s2415_s16 = int_to_ptr.vmem [resolvable:$true] %s1443_s16 }
 0x61a   : > { %s1913_s9 = scalar_lea.vmem %s2415_s16, 128  ;;  %p1920_p9 = scmp.lt.s32.totalorder %s2415_s16, %s1918_s20 }
 0x61b   : > { %p1914_p3 = scmp.ne.s32.totalorder %s2415_s16, %s1913_s9  ;;  %p1921_p0 = scmp.lt.s32.totalorder %s1919_s23, %s1913_s9 }
 0x61c   : > { %v1139_v46 = vpop.f32.mrb[10].mxu1 }
 0x61d   : > { %v1675_v47 = vpop.f32.mrb[11].mxu1  ;;  %1152 = vrot.lane.b32.xlu0 %v1139_v46, %s1998_s22  ;;  %p1915_p5 = pnand %p1914_p3, %p2486_p7  ;;  %p1922_p1 = por %p1921_p0, %p1920_p9 }
 0x61f   : > { %p1916_p8 = pneg %p1915_p5 }
 0x621   : > { %p1923_p11 = pnand %p1922_p1, %p1916_p8 }
 0x687   : > { %v1145_v48 = vpop.permute.xlu0 %1144 }
 0x688   : > { %v1155_v50 = vsel %vm498_vm2, %v917_v40, %v1145_v48 }
 0x68b   : > { %v1149_v49 = vpop.permute.xlu0 %1148 }
 0x68c   : > { %v1157_v51 = vsel %vm1156_vm3, %v1155_v50, %v1149_v49 }
 0x68f   : > { %v1153_v52 = vpop.permute.xlu0 %1152 }
 0x690   : > { %v1159_v53 = vsel %vm1158_vm4, %v1157_v51, %v1153_v52 }
 0x691   : > { %1685 = vmatmul.mubr.msk.f32.vlgmr.msra.gmra.mrb[12].mxu1 %vm384_vm0, %v1159_v53 }
 0x692   : > { %1326 = vmatprep.mubr.f32.mxu1 %v1989_v9  ;;  %v1734_v9 = vpack.c.bf16 %v1254_v60, %v1252_v59 }
 0x694   : > { %1735 = vmatprep.subr.bf16.mxu1 %v1734_v9 }
 0x764   : > { %v1233_v54 = vpop.f32.mrb[12].mxu1 }
 0x765   : > { %v2320_v55 = vadd.f32 %v1233_v54, %v2210_v0  ;;  %v1686_v56 = vpop.f32.mrb[13].mxu1  ;;  %v1251_v0 = vld [vmem:[%s2463_s5] sm:$0xff] }
 0x766   : > { %v1736_v62 = vpack.c.bf16 %v1253_v61, %v1251_v0 }
 0x767   : > { %v1238_v57 = vmul.f32 %v2320_v55, %v2320_v55 }
 0x768   : > { %1737 = vmatpush1.bf16.msra.mxu1 %v1736_v62 }
 0x769   : > { %v1239_v58 = vsel %vm384_vm0, %v1238_v57, 0.0  ;;  %1739 = vmatprep.subr.bf16.mxu1 %v1738_v2 }
 0x76a   : > { %1240 = vadd.xlane.f32.xlu1 %v1239_v58 }
 0x76c   : > { %1741 = vmatpush1.bf16.msra.mxu1 %v1740_v5 }
 0x7f7   : > { %v1241_v7 = vpop.xlane.xlu1 %1240 }
 0x7f8   : > { %v1242_v8 = vmul.f32 0.03125, %v1241_v7 }
 0x7fa   : > { %v1243_v10 = vadd.f32 1e-06, %v1242_v8 }
 0x7fc   : > { %1847 = vrsqrt.f32 %v1243_v10 }
 0x806   : > { %v1848_v11 = vpop.eup %1847 }
 0x807   : > { %v1245_v12 = vmul.f32 %v1848_v11, %v2320_v55 }
 0x809   : > { %v1250_v13 = vmul.f32 %v2239_v15, %v1245_v12  ;;  %v1344_v15 = vld [vmem:[%s2464_s6 + $0x18] sm:$0xff] }
 0x80a   : > { %v1746_v19 = vpack.c.bf16 %v1344_v15, %v1343_v18 }
 0x80b   : > { %1575 = vmatmul.mubr.msk.f32.vlgmr.msra.gmra.mrb[14].mxu1 %vm384_vm0, %v1250_v13 }
 0x80c   : > { %1747 = vmatpush3.bf16.msra.mxu0 %v1746_v19 }
 0x80d   : > { %1748 = vmatprep.subr.bf16.mxu0 %v1987_v6 }
 0x810   : > { %1750 = vmatpush3.bf16.msra.mxu0 %v1749_v22 }
 0x811   : > { %1751 = vmatprep.subr.bf16.mxu0 %v1987_v6 }
 0x814   : > { %1753 = vmatpush3.bf16.msra.mxu0 %v1752_v25 }
 0x815   : > { %1754 = vmatprep.subr.bf16.mxu0 %v1987_v6 }
 0x818   : > { %1756 = vmatpush3.bf16.msra.mxu0 %v1755_v29 }
 0x819   : > { %1757 = vmatprep.subr.bf16.mxu0 %v1987_v6 }
 0x81c   : > { %1759 = vmatpush3.bf16.msra.mxu0 %v1758_v31 }
 0x81d   : > { %1760 = vmatprep.subr.bf16.mxu0 %v1987_v6 }
 0x820   : > { %1762 = vmatpush3.bf16.msra.mxu0 %v1761_v34 }
 0x821   : > { %1763 = vmatprep.subr.bf16.mxu0 %v1987_v6 }
 0x824   : > { %1765 = vmatpush3.bf16.msra.mxu0 %v1764_v37 }
 0x8de   : > { %v1328_v38 = vpop.f32.mrb[14].mxu1 }
 0x8df   : > { %v1576_v39 = vmul.f32 -1.442695, %v1328_v38  ;;  %v1330_v40 = vpop.f32.mrb[15].mxu1 }
 0x8e1   : > { %1849 = vpow2.f32 %v1576_v39 }
 0x8eb   : > { %v1850_v41 = vpop.eup %1849 }
 0x8ec   : > { %v1336_v42 = vadd.f32 1.0, %v1850_v41 }
 0x8ee   : > { %1851 = vrcp.f32 %v1336_v42 }
 0x8f8   : > { %v1852_v6 = vpop.eup %1851 }
 0x8f9   : > { %v1339_v43 = vmul.f32 %v1852_v6, %v1328_v38 }
 0x8fb   : > { %v1340_v44 = vmul.f32 %v1339_v43, %v1330_v40 }
 0x8fd   : > { %1720 = vmatmul.mubr.f32.vlgmr.msra.gmra.mrb[6].mxu0 %v1340_v44 }
 0x9d0   : > { %v1423_v45 = vpop.f32.mrb[6].mxu0 }
 0x9d1   : > { %v1427_v46 = vadd.f32 %v1423_v45, %v2320_v55  ;;  %v1721_v47 = vpop.f32.mrb[7].mxu0 }
 0x9d3   : > { %1428 = vst.msk [vmem:[%s372_s19] sm:$0xff] %vm384_vm0, %v1427_v46 }
 0x9d4   : > { %1926 = shalt.err (!%p1923_p11)
}
 0x9d5   : > { %s1927_s26 = scalar_lea.hbm %s2413_s10, 128  ;;  %s1931_s15 = scalar_lea.hbm %s2466_s8, 256 }
 0x9d6   : > { %p1928_p12 = scmp.ne.s32.totalorder %s2413_s10, %s1927_s26  ;;  %p1932_p10 = scmp.lt.u32.totalorder %s2413_s10, %s2466_s8 }
 0x9d7   : > { %p1933_p6 = scmp.lt.u32.totalorder %s1931_s15, %s1927_s26  ;;  %p1935_p3 = scmp.lt.u32.totalorder %s1927_s26, %s2413_s10 }
 0x9d8   : > { %p1929_p2 = pnand %p1928_p12, %p2486_p7 }
 0x9d9   : > { %p1934_p13 = por %p1933_p6, %p1932_p10 }
 0x9da   : > { %p1930_p4 = pneg %p1929_p2 }
 0x9db   : > { %p1936_p5 = por %p1935_p3, %p1934_p13 }
 0x9dd   : > { %p1937_p8 = pnand %p1936_p5, %p1930_p4 }
 0x9df   : > { %1940 = shalt.err (!%p1937_p8)
}
 0x9e0   : > { %1770 = dma.vmem_to_hbm [thread:$0]  (%p2486_p7), %s2415_s16, 128, %s2413_s10, %s1430_s21  }
 0x9e1 PF: > { %s1455_s19 = sand.u32 1, %s1971_s27   ;;  %p2487_p9 = scmp.ne.s32.totalorder %s2476_s18, 0 }
 0x9e2   : > { %p2488_p0 = scmp.ge.s32.totalorder %s1983_s30, 2  ;;  %s1456_s22 = scalar_lea.sflag [#allocation4], %s1455_s19 }
 0x9e4   : > { %p1780_p1 = pnand %p2488_p0, %p2487_p9 }
 0x9e6   : > { %1966 = dma.done.wait (!%p1780_p1), %s1456_s22, 128  }
 0x9e7   : > { %1968 = vsyncadd (!%p1780_p1), %s1456_s22, 4294967168  ;;  %s2489_s14 = sld [smem:[#allocation11_spill]]  ;;  %p24_p11 = scmp.ge.s32.totalorder %s2070_s11, 4  }
 0x9e8   : > { %s2490_s27 = smov %s1975_s28  ;;  %s2491_s28 = smov %s1979_s29 }
 0x9e9   : > { %s2493_s30 = smov %s2070_s11  ;;  %26 = sbr.rel (!%p24_p11) target bundleno = 9 (0x9), region = 113 }
 0x9ed   : > { %s2492_s29 = smov %s2489_s14 }
 0x9f0   :  { %1461 = vsyncpa [#allocation3], 1 }
 0x9f1   :  { %1463 = vsyncpa [#allocation3 + $0x1], 1 }
 0x9f2   :  { %1464 = vsyncpa [#allocation6], 1 }
 0x9f3   :  { %1466 = vsyncpa [#allocation6 + $0x1], 1 }
 0x9f4   :  { %1467 = vsyncpa [#allocation4], 1 }
 0x9f5   :  { %1469 = vsyncpa [#allocation4 + $0x1], 1 }

</bundles_post_ra>
